<compile_context>
chip_gen: v5e
topology: v5e:2x2
jax: 0.10.0
libtpu: 0.0.40
codegen_flags: <defaults>
</compile_context>

<pallas_src>
import jax
import jax.numpy as jnp
from jax.experimental import pallas as pl
from jax.experimental.pallas import tpu as pltpu


def conv1x1_kernel(x_ref, w_ref, b_ref, o_ref):
    # x_ref: (C_in, TILE_P)   -- channels on sublanes, pixels on lanes
    # w_ref: (C_out, C_in)    -- VMEM-resident across all grid steps
    # b_ref: (C_out, 1)
    # o_ref: (C_out, TILE_P)
    c_in = x_ref.shape[0]
    # Start the accumulator from the (lane-broadcast) bias.
    acc = jnp.broadcast_to(b_ref[...], o_ref.shape).astype(jnp.float32)
    # K = C_in is tiny (e.g. 3): unrolled broadcast multiply-adds on the VPU.
    for c in range(c_in):
        acc = acc + w_ref[:, c:c + 1] * x_ref[c:c + 1, :]
    o_ref[...] = acc.astype(o_ref.dtype)


def conv1x1_forward(x, weight, bias, *, tile_p=2048):
    """x: (B, C_in, H, W) f32; weight: (C_out, C_in, 1, 1); bias: (C_out,)."""
    B, C_in, H, W = x.shape
    C_out = weight.shape[0]
    P = H * W

    # Free, contiguous views -- no transposes, no pads.
    xr = x.reshape(B, C_in, P)
    w2 = weight.reshape(C_out, C_in)
    b2 = bias.reshape(C_out, 1)

    # Clamp the pixel tile to the image size; small images become one step per
    # batch element (block == full dim is always a legal block shape).  For
    # large images tile_p stays a multiple of 128 and Pallas clips the ragged
    # last block (per-pixel op: tail garbage never feeds valid outputs).
    if P <= tile_p:
        tile_p = P
    n_tiles = pl.cdiv(P, tile_p)

    out = pl.pallas_call(
        conv1x1_kernel,
        out_shape=jax.ShapeDtypeStruct((B, C_out, P), x.dtype),
        grid=(B, n_tiles),
        in_specs=[
            # streamed pixel tiles of x (batch dim squeezed out of the kernel)
            pl.BlockSpec((pl.Squeezed(), C_in, tile_p), lambda b, t: (b, 0, t)),
            # weights / bias: tiny, VMEM-resident for the whole grid
            pl.BlockSpec((C_out, C_in), lambda b, t: (0, 0)),
            pl.BlockSpec((C_out, 1), lambda b, t: (0, 0)),
        ],
        out_specs=pl.BlockSpec((pl.Squeezed(), C_out, tile_p),
                               lambda b, t: (b, 0, t)),
        compiler_params=pltpu.CompilerParams(
            dimension_semantics=("parallel", "parallel"),  # megacore on v7x
            vmem_limit_bytes=32 << 20,  # explicit (v5e scoped default is 16 MiB)
        ),
    )(xr, w2, b2)

    # Output is already channels-first; reshape back to (B, C_out, H, W) is free.
    return out.reshape(B, C_out, H, W)


def conv1x1_reference(x, weight, bias):
    """Pure-JAX reference (same math, no Pallas) for correctness checking."""
    w2d = weight.reshape(weight.shape[0], weight.shape[1])
    return jnp.einsum("bchw,oc->bohw", x, w2d) + bias[None, :, None, None]


if __name__ == "__main__":
    # Shapes consistent with the module defaults: in_channels=3, out_channels=20,
    # batch=2, spatial 16x16.  edge_index / edge_attr / batch are ignored by the
    # module's forward, so they are not modeled.
    B, C_IN, C_OUT, H, W = 2, 3, 20, 16, 16

    key = jax.random.PRNGKey(0)
    kx, kw, kb = jax.random.split(key, 3)

    x = jax.random.normal(kx, (B, C_IN, H, W), dtype=jnp.float32)
    weight = 0.1 * jax.random.normal(kw, (C_OUT, C_IN, 1, 1), dtype=jnp.float32)
    bias = 0.1 * jax.random.normal(kb, (C_OUT,), dtype=jnp.float32)

    out = jax.block_until_ready(conv1x1_forward(x, weight, bias))
    ref = jax.block_until_ready(conv1x1_reference(x, weight, bias))

    assert out.shape == (B, C_OUT, H, W), out.shape
    assert bool(jnp.all(jnp.isfinite(out)))
    assert bool(jnp.allclose(out, ref, atol=1e-4, rtol=1e-4)), "mismatch vs JAX reference"
    print("KERNEL_OK")
</pallas_src>

<mosaic_0001>
module attributes {stable_mosaic.version = 11 : i64} {
  func.func @conv1x1_kernel(%arg0: i32, %arg1: i32, %arg2: memref<1x3x256xf32, #tpu.memory_space<vmem>>, %arg3: memref<20x3xf32, #tpu.memory_space<vmem>>, %arg4: memref<20x1xf32, #tpu.memory_space<vmem>>, %arg5: memref<1x20x256xf32, #tpu.memory_space<vmem>>) attributes {dimension_semantics = [#tpu.dimension_semantics<parallel>, #tpu.dimension_semantics<parallel>], iteration_bounds = array<i64: 2, 1>, scalar_prefetch = 0 : i64, scratch_operands = 0 : i64, tpu.core_type = #tpu.core_type<tc>, window_params = [{transform_indices = @transform_0, window_bounds = array<i64: 1, 3, 256>}, {pipeline_mode = #tpu.pipeline_mode<synchronous>, transform_indices = @transform_1, window_bounds = array<i64: 20, 3>}, {pipeline_mode = #tpu.pipeline_mode<synchronous>, transform_indices = @transform_2, window_bounds = array<i64: 20, 1>}, {transform_indices = @transform_3, window_bounds = array<i64: 1, 20, 256>}]} {
    %c0 = arith.constant 0 : index
    %c0_0 = arith.constant 0 : index
    %0 = vector.load %arg4[%c0, %c0_0] : memref<20x1xf32, #tpu.memory_space<vmem>>, vector<20x1xf32>
    %1 = vector.shape_cast %0 : vector<20x1xf32> to vector<20x1xf32>
    %2 = vector.broadcast %1 : vector<20x1xf32> to vector<20x256xf32>
    %c0_1 = arith.constant 0 : index
    %c0_2 = arith.constant 0 : index
    %3 = vector.load %arg3[%c0_1, %c0_2] : memref<20x3xf32, #tpu.memory_space<vmem>>, vector<20x1xf32>
    %c0_3 = arith.constant 0 : index
    %c0_4 = arith.constant 0 : index
    %c0_5 = arith.constant 0 : index
    %4 = vector.load %arg2[%c0_3, %c0_4, %c0_5] : memref<1x3x256xf32, #tpu.memory_space<vmem>>, vector<1x1x256xf32>
    %5 = vector.shape_cast %4 : vector<1x1x256xf32> to vector<1x256xf32>
    %6 = vector.broadcast %3 : vector<20x1xf32> to vector<20x256xf32>
    %7 = vector.broadcast %5 : vector<1x256xf32> to vector<20x256xf32>
    %8 = arith.mulf %6, %7 : vector<20x256xf32>
    %9 = arith.addf %2, %8 : vector<20x256xf32>
    %c0_6 = arith.constant 0 : index
    %c1 = arith.constant 1 : index
    %10 = vector.load %arg3[%c0_6, %c1] : memref<20x3xf32, #tpu.memory_space<vmem>>, vector<20x1xf32>
    %c0_7 = arith.constant 0 : index
    %c1_8 = arith.constant 1 : index
    %c0_9 = arith.constant 0 : index
    %11 = vector.load %arg2[%c0_7, %c1_8, %c0_9] : memref<1x3x256xf32, #tpu.memory_space<vmem>>, vector<1x1x256xf32>
    %12 = vector.shape_cast %11 : vector<1x1x256xf32> to vector<1x256xf32>
    %13 = vector.broadcast %10 : vector<20x1xf32> to vector<20x256xf32>
    %14 = vector.broadcast %12 : vector<1x256xf32> to vector<20x256xf32>
    %15 = arith.mulf %13, %14 : vector<20x256xf32>
    %16 = arith.addf %9, %15 : vector<20x256xf32>
    %c0_10 = arith.constant 0 : index
    %c2 = arith.constant 2 : index
    %17 = vector.load %arg3[%c0_10, %c2] : memref<20x3xf32, #tpu.memory_space<vmem>>, vector<20x1xf32>
    %c0_11 = arith.constant 0 : index
    %c2_12 = arith.constant 2 : index
    %c0_13 = arith.constant 0 : index
    %18 = vector.load %arg2[%c0_11, %c2_12, %c0_13] : memref<1x3x256xf32, #tpu.memory_space<vmem>>, vector<1x1x256xf32>
    %19 = vector.shape_cast %18 : vector<1x1x256xf32> to vector<1x256xf32>
    %20 = vector.broadcast %17 : vector<20x1xf32> to vector<20x256xf32>
    %21 = vector.broadcast %19 : vector<1x256xf32> to vector<20x256xf32>
    %22 = arith.mulf %20, %21 : vector<20x256xf32>
    %23 = arith.addf %16, %22 : vector<20x256xf32>
    %c0_14 = arith.constant 0 : index
    %c0_15 = arith.constant 0 : index
    %c0_16 = arith.constant 0 : index
    %24 = vector.load %arg5[%c0_14, %c0_15, %c0_16] : memref<1x20x256xf32, #tpu.memory_space<vmem>>, vector<1x20x256xf32>
    %25 = vector.shape_cast %24 : vector<1x20x256xf32> to vector<20x256xf32>
    %26 = vector.shape_cast %23 : vector<20x256xf32> to vector<1x20x256xf32>
    tpu.vector_store %arg5[%c0_14, %c0_15, %c0_16], %26 {strides = array<i32>} : memref<1x20x256xf32, #tpu.memory_space<vmem>>, vector<1x20x256xf32>,
    return
  }
  func.func @transform_0(%arg0: i32, %arg1: i32) -> (i32, i32, i32) {
    %c0_i32 = arith.constant 0 : i32
    %c0_i32_0 = arith.constant 0 : i32
    return %arg0, %c0_i32, %arg1 : i32, i32, i32
  }
  func.func @transform_1(%arg0: i32, %arg1: i32) -> (i32, i32) {
    %c0_i32 = arith.constant 0 : i32
    %c0_i32_0 = arith.constant 0 : i32
    %c0_i32_1 = arith.constant 0 : i32
    return %c0_i32, %c0_i32_0 : i32, i32
  }
  func.func @transform_2(%arg0: i32, %arg1: i32) -> (i32, i32) {
    %c0_i32 = arith.constant 0 : i32
    %c0_i32_0 = arith.constant 0 : i32
    %c0_i32_1 = arith.constant 0 : i32
    return %c0_i32, %c0_i32_0 : i32, i32
  }
  func.func @transform_3(%arg0: i32, %arg1: i32) -> (i32, i32, i32) {
    %c0_i32 = arith.constant 0 : i32
    %c0_i32_0 = arith.constant 0 : i32
    return %arg0, %c0_i32, %arg1 : i32, i32, i32
  }
}

</mosaic_0001>

<bundles_post_ra>
// kernel: tpu_custom_call.1
= control target key start
LH: loop header
LB: loop body
LE: loop exit
PB: predicated region body
PF: predicated region fallthrough
CT: control target
= control target key end

     0   :  { %s516_s12 = smov 0   ;;  %s518_s13 = smov 0   ;;  %s575_s0 = inlined_call_operand.vmem [shape: f32[2,3,256], index: 0, kind: input, shape index: {}]   ;;  %s576_s1 = inlined_call_operand.vmem [shape: f32[20,3], index: 1, kind: input, shape index: {}]   ;;  %s577_s2 = inlined_call_operand.vmem [shape: f32[20,1], index: 2, kind: input, shape index: {}]   ;;  %s578_s3 = inlined_call_operand.vmem [shape: f32[2,20,256], index: 3, kind: output, shape index: {}]  }
   0x1   :  { %s520_s14 = smov 0  }
   0x2 LB: > { %s25_s15 = sadd.s32 1, %s487_s13  ;;  %p423_p0 = scmp.ge.s32.totalorder %s491_s14, 1  ;;  %s491_s14 = sphi %s520_s14, %s13_s14   ;;  %s487_s13 = sphi %s518_s13, %s580_s13   ;;  %s483_s12 = sphi %s516_s12, %s579_s12  }
   0x3   : > { %p27_p1 = scmp.ge.s32.totalorder %s25_s15, 2  ;;  %p158_p2 = scmp.lt.s32.totalorder %s491_s14, 3 }
   0x5   : > { %s582_s15 = smov (%p27_p1, %s25_s15), 0  ;;  %p159_p3 = pnand %p423_p0, %p158_p2 }
   0x6   : > { %p191_p4 = scmp.lt.s32.totalorder (!%p159_p3), %s483_s12, 1 }
   0x7   : > { %162 = sbr.rel (%p159_p3) target bundleno = 163 (0xa3), region = 32 }
   0xc   : > { %v212_v0 = vld [vmem:[%s577_s2 + $0x10] sm:$0xf]  ;;  %v210_v1 = vld [vmem:[%s577_s2] sm:$0xff]  ;;  %v493_v2 = vmov 0   ;;  %v229_v3 = vld [vmem:[%s576_s1 + $0x8] sm:$0xff]  ;;  %v494_v7 = vmov 1  }
   0xd   : > { %461 = vset.pattern.permute.xlu1 %v493_v2  ;;  %460 = vset.pattern.permute.xlu0 %v493_v2  ;;  %v228_v4 = vld [vmem:[%s576_s1] sm:$0xff]  ;;  %v211_v5 = vld [vmem:[%s577_s2 + $0x8] sm:$0xff]  ;;  %v230_v6 = vld [vmem:[%s576_s1 + $0x10] sm:$0xf]  ;;  %v495_v8 = vmov 2   ;;  %s584_s12 = smov (!%p191_p4, %s483_s12), 1 }
   0xe   : > { %225 = vperm.xlu1 %461, %v212_v0   ;;  %215 = vperm.xlu0 %460, %v210_v1   ;;  %s431_s28 = sshll.u32 %s584_s12, 3  ;;  %s432_s5 = smul.u32 48, %s584_s12 }
   0xf   : > { %462 = vset.pattern.permute.xlu2 %v493_v2  ;;  %s198_s4 = scalar_lea.vmem %s575_s0, %s431_s28 }
  0x10   : > { %239 = vperm.xlu2 %462, %v229_v3   ;;  %v231_v16 = vld [vmem:[%s198_s4] ss:$4 sm:$0x3]  ;;  %v428_v17 = vld [vmem:[%s198_s4 + $0x2] ss:$4 sm:$0x3]  ;;  %s208_s8 = scalar_lea.vmem %s578_s3, %s432_s5 }
  0x11   : > { %v248_v18 = vperm.slane %v231_v16, 0  ;;  %v427_v19 = vld [vmem:[%s198_s4 + $0x1] ss:$4 sm:$0x3]  ;;  %v310_v20 = vperm.slane %v428_v17, 0  ;;  %v311_v21 = vperm.slane %v428_v17, 1 }
  0x12   : > { %v249_v22 = vperm.slane %v231_v16, 1  ;;  %v279_v26 = vperm.slane %v427_v19, 0  ;;  %v280_v27 = vperm.slane %v427_v19, 1 }
  0x16   : > { %234 = vperm.xlu1 %461, %v228_v4   ;;  %220 = vperm.xlu0 %460, %v211_v5  }
  0x18   : > { %244 = vperm.xlu2 %462, %v230_v6  }
  0x1e   : > { %464 = vset.pattern.permute.xlu1 %v494_v7  ;;  %463 = vset.pattern.permute.xlu0 %v494_v7 }
  0x1f   : > { %271 = vperm.xlu1 %464, %v229_v3   ;;  %267 = vperm.xlu0 %463, %v228_v4  }
  0x20   : > { %465 = vset.pattern.permute.xlu2 %v494_v7 }
  0x21   : > { %275 = vperm.xlu2 %465, %v230_v6  }
  0x27   : > { %466 = vset.pattern.permute.xlu1 %v495_v8  ;;  %468 = vset.pattern.permute.xlu0 %v495_v8 }
  0x28   : > { %298 = vperm.xlu1 %466, %v228_v4   ;;  %306 = vperm.xlu0 %468, %v230_v6  }
  0x29   : > { %467 = vset.pattern.permute.xlu2 %v495_v8 }
  0x2a   : > { %302 = vperm.xlu2 %467, %v229_v3  }
  0x6a   : > { %v240_v9 = vpop.permute.xlu2 %239 }
  0x6b   : > { %v254_v24 = vmul.f32 %v248_v18, %v240_v9  ;;  %v255_v25 = vmul.f32 %v249_v22, %v240_v9 }
  0x72   : > { %v245_v10 = vpop.permute.xlu2 %244 }
  0x73   : > { %v256_v28 = vmul.f32 %v248_v18, %v245_v10  ;;  %v257_v37 = vmul.f32 %v249_v22, %v245_v10 }
  0x7b   : > { %v276_v13 = vpop.permute.xlu2 %275 }
  0x7c   : > { %v287_v42 = vmul.f32 %v279_v26, %v276_v13  ;;  %v288_v48 = vmul.f32 %v280_v27, %v276_v13 }
  0x80   : > { %v226_v11 = vpop.permute.xlu1 %225  ;;  %v216_v12 = vpop.permute.xlu0 %215 }
  0x81   : > { %v262_v43 = vadd.f32 %v256_v28, %v226_v11  ;;  %v263_v49 = vadd.f32 %v257_v37, %v226_v11 }
  0x83   : > { %v293_v52 = vadd.f32 %v287_v42, %v262_v43  ;;  %v294_v61 = vadd.f32 %v288_v48, %v263_v49 }
  0x84   : > { %v303_v23 = vpop.permute.xlu2 %302 }
  0x85   : > { %v316_v31 = vmul.f32 %v310_v20, %v303_v23  ;;  %v317_v32 = vmul.f32 %v311_v21, %v303_v23 }
  0x88   : > { %v235_v14 = vpop.permute.xlu1 %234  ;;  %v221_v15 = vpop.permute.xlu0 %220 }
  0x89   : > { %v260_v33 = vadd.f32 %v254_v24, %v221_v15  ;;  %v261_v34 = vadd.f32 %v255_v25, %v221_v15  ;;  %v252_v38 = vmul.f32 %v248_v18, %v235_v14  ;;  %v253_v39 = vmul.f32 %v249_v22, %v235_v14 }
  0x8b   : > { %v258_v50 = vadd.f32 %v252_v38, %v216_v12  ;;  %v259_v51 = vadd.f32 %v253_v39, %v216_v12 }
  0x91   : > { %v272_v29 = vpop.permute.xlu1 %271  ;;  %v268_v30 = vpop.permute.xlu0 %267 }
  0x92   : > { %v285_v35 = vmul.f32 %v279_v26, %v272_v29  ;;  %v286_v36 = vmul.f32 %v280_v27, %v272_v29  ;;  %v283_v44 = vmul.f32 %v279_v26, %v268_v30  ;;  %v284_v45 = vmul.f32 %v280_v27, %v268_v30 }
  0x94   : > { %v291_v40 = vadd.f32 %v285_v35, %v260_v33  ;;  %v292_v41 = vadd.f32 %v286_v36, %v261_v34  ;;  %v289_v53 = vadd.f32 %v283_v44, %v258_v50  ;;  %v290_v54 = vadd.f32 %v284_v45, %v259_v51 }
  0x96   : > { %v322_v46 = vadd.f32 %v316_v31, %v291_v40  ;;  %v323_v47 = vadd.f32 %v317_v32, %v292_v41 }
  0x98   : > { %328 = vst [vmem:[%s208_s8 + $0x10] sm:$0xff] %v322_v46 }
  0x99   : > { %329 = vst [vmem:[%s208_s8 + $0x18] sm:$0xff] %v323_v47 }
  0x9a   : > { %v299_v55 = vpop.permute.xlu1 %298  ;;  %v307_v56 = vpop.permute.xlu0 %306 }
  0x9b   : > { %v314_v57 = vmul.f32 %v310_v20, %v299_v55  ;;  %v315_v58 = vmul.f32 %v311_v21, %v299_v55  ;;  %v318_v59 = vmul.f32 %v310_v20, %v307_v56  ;;  %v319_v60 = vmul.f32 %v311_v21, %v307_v56 }
  0x9d   : > { %v320_v62 = vadd.f32 %v314_v57, %v289_v53  ;;  %v321_v63 = vadd.f32 %v315_v58, %v290_v54  ;;  %v324_v0 = vadd.f32 %v318_v59, %v293_v52  ;;  %v325_v1 = vadd.f32 %v319_v60, %v294_v61 }
  0x9f   : > { %326 = vst [vmem:[%s208_s8] sm:$0xff] %v320_v62 }
  0xa0   : > { %327 = vst [vmem:[%s208_s8 + $0x8] sm:$0xff] %v321_v63 }
  0xa1   : > { %330 = vst [vmem:[%s208_s8 + $0x20] sm:$0xf] %v324_v0 }
  0xa2   : > { %331 = vst [vmem:[%s208_s8 + $0x28] sm:$0xf] %v325_v1 }
  0xa3 PF: > { %s13_s14 = sadd.s32 1, %s491_s14   ;;  %s579_s12 = smov %s487_s13 }
  0xa4   : > { %p10_p5 = scmp.ge.s32.totalorder %s13_s14, 4   ;;  %s580_s13 = smov %s582_s15 }
  0xa6   :  { %12 = sbr.rel (!%p10_p5) target bundleno = 2 (0x2), region = 64 }

</bundles_post_ra>
